<compile_context>
chip_gen: v7x
topology: tpu7x:2x2x1
jax: 0.10.0
libtpu: 0.0.40
codegen_flags: <defaults>
</compile_context>

<pallas_src>
import jax
import jax.numpy as jnp
from jax.experimental import pallas as pl
from jax.experimental.pallas import tpu as pltpu


def _identity_dma_kernel(x_hbm_ref, o_hbm_ref, sem):
    # Single HBM -> HBM DMA of the whole block.  No VMEM staging, no grid,
    # no vld/vst bundle work — the DMA engine does the entire copy.
    cp = pltpu.make_async_copy(x_hbm_ref, o_hbm_ref, sem)
    cp.start()
    cp.wait()


def identity_pallas(x: jax.Array, *, materialize: bool = False) -> jax.Array:
    """Identity forward pass on one TensorMap block.

    materialize=False (default): return the input unchanged — identity needs
    zero bytes moved, so no kernel is launched.

    materialize=True: return a distinct output buffer produced by a single
    HBM->HBM DMA inside a Pallas kernel (useful when the caller requires a
    fresh buffer, e.g. donation / aliasing constraints downstream).
    """
    if not materialize:
        # Uniform aliasing policy for every block size.
        return x

    if x.size == 0:
        # Nothing to copy; an empty DMA is pointless.
        return jnp.array(x, copy=True)

    nbytes = x.size * jnp.dtype(x.dtype).itemsize

    return pl.pallas_call(
        _identity_dma_kernel,
        out_shape=jax.ShapeDtypeStruct(x.shape, x.dtype),
        in_specs=[pl.BlockSpec(memory_space=pl.ANY)],
        out_specs=pl.BlockSpec(memory_space=pl.ANY),
        scratch_shapes=[pltpu.SemaphoreType.DMA(())],
        cost_estimate=pl.CostEstimate(
            flops=0,
            transcendentals=0,
            bytes_accessed=2 * nbytes,
        ),
    )(x)


def identity_forward(tensormap: dict, *, materialize: bool = False) -> dict:
    """Mimics Identity.forward(x: TensorMap) -> TensorMap.

    A TensorMap is represented as a dict of {key: block array}; each block's
    dense values pass through the identity (alias by default, or one DMA copy
    per block when materialize=True).
    """
    # TODO(synk): metatensor TensorMap metadata (keys/samples/components
    # labels) has no Pallas equivalent; only dense block values are handled.
    return {k: identity_pallas(v, materialize=materialize) for k, v in tensormap.items()}


if __name__ == "__main__":
    key = jax.random.PRNGKey(0)
    k1, k2, k3, k4 = jax.random.split(key, 4)

    # Small synthetic "TensorMap" with ragged / narrow / mixed-dtype blocks.
    # The DMA path has no (8,128) layout requirements, so odd shapes are fine.
    tmap = {
        "block_0": jax.random.normal(k1, (8, 32), dtype=jnp.float32),
        "block_1": jax.random.normal(k2, (5, 20), dtype=jnp.float32),
        "block_2": jax.random.normal(k3, (256, 128), dtype=jnp.float32),
        "block_3": jax.random.normal(k4, (30, 96), dtype=jnp.float32).astype(jnp.bfloat16),
    }

    # Default (hot) path: pure pass-through, zero bytes moved.
    out_alias = identity_forward(tmap)
    for v in out_alias.values():
        jax.block_until_ready(v)

    # Materialized path: exercises the Pallas HBM->HBM DMA kernel once per block.
    out_mat = identity_forward(tmap, materialize=True)
    for v in out_mat.values():
        jax.block_until_ready(v)

    # Verify identity semantics exactly on both paths.
    for k in tmap:
        assert out_alias[k].shape == tmap[k].shape and out_alias[k].dtype == tmap[k].dtype, k
        assert bool(jnp.all(out_alias[k] == tmap[k])), k
        assert out_mat[k].shape == tmap[k].shape and out_mat[k].dtype == tmap[k].dtype, k
        assert bool(jnp.all(out_mat[k] == tmap[k])), k

    print("KERNEL_OK")
</pallas_src>

<mosaic_0001>
module attributes {stable_mosaic.version = 11 : i64} {
  func.func @_identity_dma_kernel(%arg0: memref<8x32xf32, #tpu.memory_space<any>>, %arg1: memref<8x32xf32, #tpu.memory_space<any>>, %arg2: memref<!tpu.dma_semaphore, #tpu.memory_space<semaphore_mem>>) attributes {dimension_semantics = [], scalar_prefetch = 0 : i64, scratch_operands = 1 : i64, tpu.core_type = #tpu.core_type<tc>} {
    tpu.enqueue_dma source(%arg0 : memref<8x32xf32, #tpu.memory_space<any>>) target(%arg1 : memref<8x32xf32, #tpu.memory_space<any>>) target_semaphore(%arg2 : memref<!tpu.dma_semaphore, #tpu.memory_space<semaphore_mem>>)
    tpu.wait_dma2 semaphore(%arg2 : memref<!tpu.dma_semaphore, #tpu.memory_space<semaphore_mem>>) src(%arg0 : memref<8x32xf32, #tpu.memory_space<any>>) dst(%arg1 : memref<8x32xf32, #tpu.memory_space<any>>)
    return
  }
}

</mosaic_0001>

<bundles_post_ra>
// kernel: tpu_custom_call.1
= control target key start
LH: loop header
LB: loop body
LE: loop exit
PB: predicated region body
PF: predicated region fallthrough
CT: control target
= control target key end

     0   :  { %s34_s6 = smov [#allocation2]   ;;  %s35_s7 = smov [#allocation3]   ;;  %s53_s0 = inlined_call_operand.hbm [shape: f32[8,32], index: 0, kind: input, shape index: {}]   ;;  %s54_s1 = inlined_call_operand.hbm [shape: f32[8,32], index: 1, kind: output, shape index: {}]  }
   0x1   :  { %s36_s8 = smov 0  }
   0x2   :  { %18 = dma.general %s53_s0, 128, %s54_s1, %s34_s6, %s35_s7, [#allocation4], %s36_s8, 0  }
   0x3   :  { %32 = dma.done.wait [#allocation2], 128 }
   0x4   :  { %33 = vsyncadd [#allocation2], 4294967168 }
   0x5   :  { %22 = vsyncmov [#allocation2] }
   0x8   :  { %s23_s13 = vpop.sfrf %22 }
   0x9   :  { %p28_p0 = scmp.ne.s32.totalorder %s23_s13, 0 }
   0xb   :  { %27 = shalt.err (%p28_p0)  }

</bundles_post_ra>
